<compile_context>
chip_gen: v5e
topology: v5e:2x2
jax: 0.10.0
libtpu: 0.0.40
codegen_flags: <defaults>
</compile_context>

<pallas_src>
import functools

import jax
import jax.numpy as jnp
from jax.experimental import pallas as pl
from jax.experimental.pallas import tpu as pltpu


def _round_up(x, m):
    return ((x + m - 1) // m) * m


def _vmem_capacity_bytes():
    try:
        return int(pltpu.get_tpu_info().vmem_capacity_bytes)
    except Exception:
        return 64 * 1024 * 1024  # conservative fallback (v7x per-core VMEM)


def _tensorcores_per_device():
    """Best-effort count of TensorCores addressable by one pallas_call
    (chips where dimension_semantics='parallel' shards the grid across cores).
    Falls back to 1, which keeps single-core behavior unchanged."""
    try:
        dev = jax.devices()[0]
        n = getattr(dev, "num_cores", None)
        if n:
            return int(n)
        kind = str(getattr(dev, "device_kind", "")).lower()
        if ("v4" in kind) or ("v5p" in kind) or ("v7" in kind):
            return 2
    except Exception:
        pass
    return 1


def _rnn_chunk_kernel(tc_steps, unroll, x_ref, h0_ref, whh_ref, y_ref, h_scr):
    """One grid step = one (batch chunk, time chunk).

    x_ref  : (Tc, Bc, Hp) storage dtype  precomputed x@W_ih^T + b (hoisted)
    h0_ref : (Bc, Hp)     storage dtype  initial hidden state for this batch chunk
    whh_ref: (Hp, Hp)     storage dtype  W_hh^T (resident; constant index_map)
    y_ref  : (Tc, Bc, Hp) storage dtype  hidden states for this chunk
    h_scr  : (Bc, Hp)     storage dtype  hidden state carried across time chunks

    NOTE: the h_scr carry is only correct because the TIME axis is the LAST
    (innermost, sequential) grid dimension and is marked "arbitrary".  Do not
    reorder the grid or mark the time axis "parallel".
    """
    @pl.when(pl.program_id(1) == 0)
    def _():
        h_scr[...] = h0_ref[...]

    def step(t, h):
        # W_hh^T is referenced inside the loop body (kept in VMEM; not hoisted
        # into long-lived vregs across iterations -> no spills at large Hp).
        # TODO(synk): stage the invariant RHS across steps with
        # pltpu.matmul_push_rhs / matmul_acc_lhs / matmul_pop and interleave
        # independent batch sub-tiles (MXU/EUP overlap); skipped here because
        # those primitives are generation-specific and without staged weights
        # the sub-tile split multiplies RHS pushes.
        acc = jnp.dot(h, whh_ref[...], preferred_element_type=jnp.float32)
        h_new = jnp.tanh(x_ref[t] + acc)            # f32 add + tanh
        h_new = h_new.astype(y_ref.dtype)
        y_ref[t] = h_new
        return h_new

    h_scr[...] = jax.lax.fori_loop(0, tc_steps, step, h_scr[...], unroll=unroll)


@functools.partial(jax.jit, static_argnames=("compute_dtype",))
def decoder_forward(x_idx, state, params, compute_dtype=jnp.float32):
    """x_idx: (T, B) int32 tokens; state: (1, B, H) float32.

    Returns (y, new_state) with y: (T, B, H), new_state: (1, B, H), matching
    PyTorch nn.Embedding + nn.RNN(nonlinearity='tanh') semantics.
    `compute_dtype=jnp.bfloat16` stores x/y/h/W_hh in bf16 with f32
    accumulation (recommended on v6e / v7x); keep float32 for exactness / v5e.
    """
    emb_w, w_ih, w_hh = params["embedding"], params["w_ih"], params["w_hh"]
    b = params["b_ih"] + params["b_hh"]
    T, B = x_idx.shape
    V, H = emb_w.shape
    f32 = jnp.float32
    io_dtype = jnp.dtype(compute_dtype)
    io_size = io_dtype.itemsize
    sub = 8 * (4 // io_size)                 # sublane grain: 8 f32, 16 bf16

    Hp = max(128, _round_up(H, 128))

    # ---- Hoisted input projection (off the serial critical path), produced
    # directly at lane width Hp so no extra pad pass over the biggest array. --
    w_ih_T = jnp.zeros((H, Hp), f32).at[:, :H].set(w_ih.T.astype(f32))
    bias = jnp.zeros((Hp,), f32).at[:H].set(b.astype(f32))
    if V <= T * B:
        # Small vocab: project the embedding table once, then pure gather.
        # TODO(synk): jnp.take clamps out-of-range token ids; PyTorch raises.
        emb_proj = jnp.dot(emb_w.astype(f32), w_ih_T,
                           preferred_element_type=f32) + bias         # (V, Hp)
        x_proj = jnp.take(emb_proj, x_idx, axis=0)                    # (T,B,Hp)
    else:
        x_emb = jnp.take(emb_w, x_idx, axis=0).astype(f32)            # (T,B,H)
        x_proj = (jnp.dot(x_emb.reshape(T * B, H), w_ih_T,
                          preferred_element_type=f32) + bias
                  ).reshape(T, B, Hp)
    x_proj = x_proj.astype(io_dtype)

    # ---- Batch tiling -------------------------------------------------------
    # Cap the carried hidden tile at ~64 KiB (bounds vreg/spill pressure).
    bc_cap = max(sub, ((64 * 1024) // (4 * Hp)) // sub * sub)
    n_cores = _tensorcores_per_device()
    Bp = max(sub, _round_up(B, sub))
    Bc = min(Bp, bc_cap)
    if n_cores >= 2 and Bp >= 2 * sub and (Bp + Bc - 1) // Bc < n_cores:
        # Make the "parallel" batch axis actually shard across TensorCores.
        Bc = min(bc_cap, max(sub, _round_up((Bp + n_cores - 1) // n_cores, sub)))
    Bp = _round_up(Bp, Bc)
    nb = Bp // Bc

    # ---- Time chunking: generation-aware VMEM budget ------------------------
    vmem_cap = _vmem_capacity_bytes()
    usable = int(vmem_cap * 0.7)
    weights_bytes = 2 * Hp * Hp * io_size          # assume double-buffered
    fixed_bytes = weights_bytes + 3 * Bc * Hp * io_size + (2 << 20)
    io_budget = max(usable - fixed_bytes, 2 << 20)
    tc_max = max(1, io_budget // (4 * Bc * Hp * io_size))  # x + y, double-buf
    if T <= tc_max:
        Tc = T
    else:
        # Prefer a Tc dividing T: no dead serial steps on zero padding.
        Tc = tc_max
        for d in range(tc_max, 0, -1):
            if T % d == 0:
                if d >= max(1, tc_max // 2):
                    Tc = d
                break
    Tp = _round_up(T, Tc)
    nt = Tp // Tc
    unroll = int(min(8, Tc))   # cap unroll; full unroll blows up live ranges

    # ---- Pad operands only when needed (zero padding is exact: tanh(0)=0 and
    # zero rows/cols of W keep padded lanes/rows inert). -----------------------
    x_pad = (x_proj if (Tp, Bp) == (T, B)
             else jnp.pad(x_proj, ((0, Tp - T), (0, Bp - B), (0, 0))))
    h0 = state[0].astype(io_dtype)
    h0_pad = (h0 if (Bp, Hp) == (B, H)
              else jnp.pad(h0, ((0, Bp - B), (0, Hp - H))))
    whh_T = w_hh.T.astype(io_dtype)
    whh_pad = (whh_T if Hp == H
               else jnp.pad(whh_T, ((0, Hp - H), (0, Hp - H))))

    grid_spec = pltpu.PrefetchScalarGridSpec(
        num_scalar_prefetch=0,
        grid=(nb, nt),           # batch ("parallel") outer, time (seq.) inner
        in_specs=[
            pl.BlockSpec((Tc, Bc, Hp), lambda bi, ti: (ti, bi, 0)),   # x chunk
            pl.BlockSpec((Bc, Hp), lambda bi, ti: (bi, 0)),           # h0
            pl.BlockSpec((Hp, Hp), lambda bi, ti: (0, 0)),            # W_hh^T
        ],
        out_specs=pl.BlockSpec((Tc, Bc, Hp), lambda bi, ti: (ti, bi, 0)),
        scratch_shapes=[pltpu.VMEM((Bc, Hp), io_dtype)],              # h carry
    )

    cost = pl.CostEstimate(
        flops=2 * Tp * Bp * Hp * Hp,
        transcendentals=Tp * Bp * Hp,
        bytes_accessed=(2 * Tp * Bp * Hp + 3 * Bp * Hp + Hp * Hp) * io_size,
    )

    vmem_used = (4 * Tc * Bc * Hp * io_size + weights_bytes
                 + 3 * Bc * Hp * io_size)
    vmem_limit = int(min(int(vmem_cap * 0.85), max(2 * vmem_used, 8 << 20)))
    compiler_params = pltpu.CompilerParams(
        # Time MUST stay innermost and "arbitrary": the h carry depends on it.
        dimension_semantics=("parallel", "arbitrary"),
        vmem_limit_bytes=vmem_limit,
    )

    y_pad = pl.pallas_call(
        functools.partial(_rnn_chunk_kernel, Tc, unroll),
        out_shape=jax.ShapeDtypeStruct((Tp, Bp, Hp), io_dtype),
        grid_spec=grid_spec,
        compiler_params=compiler_params,
        cost_estimate=cost,
    )(x_pad, h0_pad, whh_pad)

    y = y_pad[:T, :B, :H]
    new_state = y_pad[T - 1, :B, :H][None]   # final hidden == last valid step
    return y, new_state


def init_params(key, input_size, hidden_size):
    """Deterministic init matching PyTorch defaults:
    Embedding ~ N(0,1); RNN weights/biases ~ U(-1/sqrt(H), 1/sqrt(H))."""
    k_emb, k_wih, k_whh, k_bih, k_bhh = jax.random.split(key, 5)
    bound = 1.0 / (hidden_size ** 0.5)
    return {
        "embedding": jax.random.normal(
            k_emb, (input_size, hidden_size), jnp.float32),
        "w_ih": jax.random.uniform(
            k_wih, (hidden_size, hidden_size), jnp.float32, -bound, bound),
        "w_hh": jax.random.uniform(
            k_whh, (hidden_size, hidden_size), jnp.float32, -bound, bound),
        "b_ih": jax.random.uniform(
            k_bih, (hidden_size,), jnp.float32, -bound, bound),
        "b_hh": jax.random.uniform(
            k_bhh, (hidden_size,), jnp.float32, -bound, bound),
    }


def _reference_forward(x_idx, state, params):
    """Pure-JAX reference (scan) mirroring nn.Embedding + nn.RNN(tanh)."""
    x_emb = jnp.take(params["embedding"], x_idx, axis=0)
    b = params["b_ih"] + params["b_hh"]

    def step(h, x_t):
        h_new = jnp.tanh(x_t @ params["w_ih"].T + h @ params["w_hh"].T + b)
        return h_new, h_new

    h_final, ys = jax.lax.scan(step, state[0], x_emb)
    return ys, h_final[None]


if __name__ == "__main__":
    input_size = 16    # vocab size
    hidden_size = 32   # module default is 256; kept small for the demo
    seq_len = 8
    batch = 12         # not a multiple of 8 -> exercises the padding path

    key = jax.random.PRNGKey(0)
    k_params, k_x, k_h = jax.random.split(key, 3)

    params = init_params(k_params, input_size, hidden_size)
    x_idx = jax.random.randint(k_x, (seq_len, batch), 0, input_size, jnp.int32)
    state0 = jax.random.normal(k_h, (1, batch, hidden_size), jnp.float32)

    y_ref, state_ref = _reference_forward(x_idx, state0, params)

    # Exact (f32) path.
    y, state = decoder_forward(x_idx, state0, params)
    y = jax.block_until_ready(y)
    state = jax.block_until_ready(state)
    assert y.shape == (seq_len, batch, hidden_size)
    assert state.shape == (1, batch, hidden_size)
    assert jnp.allclose(y, y_ref, atol=1e-4, rtol=1e-4)
    assert jnp.allclose(state, state_ref, atol=1e-4, rtol=1e-4)

    # bf16-storage / bf16-MXU path (v6e / v7x recommendation), f32 accumulation.
    y_bf, state_bf = decoder_forward(x_idx, state0, params,
                                     compute_dtype=jnp.bfloat16)
    y_bf = jax.block_until_ready(y_bf)
    state_bf = jax.block_until_ready(state_bf)
    assert jnp.allclose(y_bf.astype(jnp.float32), y_ref, atol=1e-1, rtol=1e-1)
    assert jnp.allclose(state_bf.astype(jnp.float32), state_ref,
                        atol=1e-1, rtol=1e-1)

    print("KERNEL_OK")
</pallas_src>

<mosaic_0001>
module attributes {stable_mosaic.version = 11 : i64} {
  func.func @_rnn_chunk_kernel(%arg0: i32, %arg1: i32, %arg2: memref<8x16x128xf32, #tpu.memory_space<vmem>>, %arg3: memref<16x128xf32, #tpu.memory_space<vmem>>, %arg4: memref<128x128xf32, #tpu.memory_space<vmem>>, %arg5: memref<8x16x128xf32, #tpu.memory_space<vmem>>, %arg6: memref<16x128xf32, #tpu.memory_space<vmem>>) attributes {dimension_semantics = [#tpu.dimension_semantics<parallel>, #tpu.dimension_semantics<arbitrary>], iteration_bounds = array<i64: 1, 1>, scalar_prefetch = 0 : i64, scratch_operands = 1 : i64, tpu.core_type = #tpu.core_type<tc>, window_params = [{transform_indices = @transform_0, window_bounds = array<i64: 8, 16, 128>}, {transform_indices = @transform_1, window_bounds = array<i64: 16, 128>}, {pipeline_mode = #tpu.pipeline_mode<synchronous>, transform_indices = @transform_2, window_bounds = array<i64: 128, 128>}, {transform_indices = @transform_3, window_bounds = array<i64: 8, 16, 128>}]} {
    %c0_i32 = arith.constant 0 : i32
    %0 = arith.cmpi eq, %arg1, %c0_i32 : i32
    %1 = arith.extui %0 : i1 to i32
    %c0_i32_0 = arith.constant 0 : i32
    %2 = arith.cmpi ne, %1, %c0_i32_0 : i32
    scf.if %2 {
      %c0_60 = arith.constant 0 : index
      %c0_61 = arith.constant 0 : index
      %93 = vector.load %arg3[%c0_60, %c0_61] : memref<16x128xf32, #tpu.memory_space<vmem>>, vector<16x128xf32>
      %c0_62 = arith.constant 0 : index
      %c0_63 = arith.constant 0 : index
      %94 = vector.load %arg6[%c0_62, %c0_63] : memref<16x128xf32, #tpu.memory_space<vmem>>, vector<16x128xf32>
      tpu.vector_store %arg6[%c0_62, %c0_63], %93 {strides = array<i32>} : memref<16x128xf32, #tpu.memory_space<vmem>>, vector<16x128xf32>,
    } else {
    }
    %c0 = arith.constant 0 : index
    %c0_1 = arith.constant 0 : index
    %3 = vector.load %arg6[%c0, %c0_1] : memref<16x128xf32, #tpu.memory_space<vmem>>, vector<16x128xf32>
    %c0_i32_2 = arith.constant 0 : i32
    %c0_3 = arith.constant 0 : index
    %c0_4 = arith.constant 0 : index
    %4 = vector.load %arg4[%c0_3, %c0_4] : memref<128x128xf32, #tpu.memory_space<vmem>>, vector<128x128xf32>
    %cst = arith.constant dense<0.000000e+00> : vector<16x128xf32>
    %5 = tpu.matmul %3, %4, %cst {dimension_numbers = #tpu.dot_dimension_numbers<[1], [0], [0], [1], [0, 0, 1, 1], [], []>} : vector<16x128xf32>, vector<128x128xf32>, vector<16x128xf32> -> vector<16x128xf32>
    %6 = arith.index_cast %c0_i32_2 : i32 to index
    %c0_5 = arith.constant 0 : index
    %c0_6 = arith.constant 0 : index
    %7 = vector.load %arg2[%6, %c0_5, %c0_6] : memref<8x16x128xf32, #tpu.memory_space<vmem>>, vector<1x16x128xf32>
    %8 = vector.shape_cast %7 : vector<1x16x128xf32> to vector<16x128xf32>
    %9 = arith.addf %8, %5 : vector<16x128xf32>
    %10 = math.tanh %9 : vector<16x128xf32>
    %11 = arith.index_cast %c0_i32_2 : i32 to index
    %c0_7 = arith.constant 0 : index
    %c0_8 = arith.constant 0 : index
    %12 = vector.load %arg5[%11, %c0_7, %c0_8] : memref<8x16x128xf32, #tpu.memory_space<vmem>>, vector<1x16x128xf32>
    %13 = vector.shape_cast %12 : vector<1x16x128xf32> to vector<16x128xf32>
    %14 = vector.shape_cast %10 : vector<16x128xf32> to vector<1x16x128xf32>
    tpu.vector_store %arg5[%11, %c0_7, %c0_8], %14 {strides = array<i32>} : memref<8x16x128xf32, #tpu.memory_space<vmem>>, vector<1x16x128xf32>,
    %c1_i32 = arith.constant 1 : i32
    %c0_9 = arith.constant 0 : index
    %c0_10 = arith.constant 0 : index
    %15 = vector.load %arg4[%c0_9, %c0_10] : memref<128x128xf32, #tpu.memory_space<vmem>>, vector<128x128xf32>
    %cst_11 = arith.constant dense<0.000000e+00> : vector<16x128xf32>
    %16 = tpu.matmul %10, %15, %cst_11 {dimension_numbers = #tpu.dot_dimension_numbers<[1], [0], [0], [1], [0, 0, 1, 1], [], []>} : vector<16x128xf32>, vector<128x128xf32>, vector<16x128xf32> -> vector<16x128xf32>
    %17 = arith.index_cast %c1_i32 : i32 to index
    %c0_12 = arith.constant 0 : index
    %c0_13 = arith.constant 0 : index
    %18 = vector.load %arg2[%17, %c0_12, %c0_13] : memref<8x16x128xf32, #tpu.memory_space<vmem>>, vector<1x16x128xf32>
    %19 = vector.shape_cast %18 : vector<1x16x128xf32> to vector<16x128xf32>
    %20 = arith.addf %19, %16 : vector<16x128xf32>
    %21 = math.tanh %20 : vector<16x128xf32>
    %22 = arith.index_cast %c1_i32 : i32 to index
    %c0_14 = arith.constant 0 : index
    %c0_15 = arith.constant 0 : index
    %23 = vector.load %arg5[%22, %c0_14, %c0_15] : memref<8x16x128xf32, #tpu.memory_space<vmem>>, vector<1x16x128xf32>
    %24 = vector.shape_cast %23 : vector<1x16x128xf32> to vector<16x128xf32>
    %25 = vector.shape_cast %21 : vector<16x128xf32> to vector<1x16x128xf32>
    tpu.vector_store %arg5[%22, %c0_14, %c0_15], %25 {strides = array<i32>} : memref<8x16x128xf32, #tpu.memory_space<vmem>>, vector<1x16x128xf32>,
    %c2_i32 = arith.constant 2 : i32
    %c0_16 = arith.constant 0 : index
    %c0_17 = arith.constant 0 : index
    %26 = vector.load %arg4[%c0_16, %c0_17] : memref<128x128xf32, #tpu.memory_space<vmem>>, vector<128x128xf32>
    %cst_18 = arith.constant dense<0.000000e+00> : vector<16x128xf32>
    %27 = tpu.matmul %21, %26, %cst_18 {dimension_numbers = #tpu.dot_dimension_numbers<[1], [0], [0], [1], [0, 0, 1, 1], [], []>} : vector<16x128xf32>, vector<128x128xf32>, vector<16x128xf32> -> vector<16x128xf32>
    %28 = arith.index_cast %c2_i32 : i32 to index
    %c0_19 = arith.constant 0 : index
    %c0_20 = arith.constant 0 : index
    %29 = vector.load %arg2[%28, %c0_19, %c0_20] : memref<8x16x128xf32, #tpu.memory_space<vmem>>, vector<1x16x128xf32>
    %30 = vector.shape_cast %29 : vector<1x16x128xf32> to vector<16x128xf32>
    %31 = arith.addf %30, %27 : vector<16x128xf32>
    %32 = math.tanh %31 : vector<16x128xf32>
    %33 = arith.index_cast %c2_i32 : i32 to index
    %c0_21 = arith.constant 0 : index
    %c0_22 = arith.constant 0 : index
    %34 = vector.load %arg5[%33, %c0_21, %c0_22] : memref<8x16x128xf32, #tpu.memory_space<vmem>>, vector<1x16x128xf32>
    %35 = vector.shape_cast %34 : vector<1x16x128xf32> to vector<16x128xf32>
    %36 = vector.shape_cast %32 : vector<16x128xf32> to vector<1x16x128xf32>
    tpu.vector_store %arg5[%33, %c0_21, %c0_22], %36 {strides = array<i32>} : memref<8x16x128xf32, #tpu.memory_space<vmem>>, vector<1x16x128xf32>,
    %c3_i32 = arith.constant 3 : i32
    %c0_23 = arith.constant 0 : index
    %c0_24 = arith.constant 0 : index
    %37 = vector.load %arg4[%c0_23, %c0_24] : memref<128x128xf32, #tpu.memory_space<vmem>>, vector<128x128xf32>
    %cst_25 = arith.constant dense<0.000000e+00> : vector<16x128xf32>
    %38 = tpu.matmul %32, %37, %cst_25 {dimension_numbers = #tpu.dot_dimension_numbers<[1], [0], [0], [1], [0, 0, 1, 1], [], []>} : vector<16x128xf32>, vector<128x128xf32>, vector<16x128xf32> -> vector<16x128xf32>
    %39 = arith.index_cast %c3_i32 : i32 to index
    %c0_26 = arith.constant 0 : index
    %c0_27 = arith.constant 0 : index
    %40 = vector.load %arg2[%39, %c0_26, %c0_27] : memref<8x16x128xf32, #tpu.memory_space<vmem>>, vector<1x16x128xf32>
    %41 = vector.shape_cast %40 : vector<1x16x128xf32> to vector<16x128xf32>
    %42 = arith.addf %41, %38 : vector<16x128xf32>
    %43 = math.tanh %42 : vector<16x128xf32>
    %44 = arith.index_cast %c3_i32 : i32 to index
    %c0_28 = arith.constant 0 : index
    %c0_29 = arith.constant 0 : index
    %45 = vector.load %arg5[%44, %c0_28, %c0_29] : memref<8x16x128xf32, #tpu.memory_space<vmem>>, vector<1x16x128xf32>
    %46 = vector.shape_cast %45 : vector<1x16x128xf32> to vector<16x128xf32>
    %47 = vector.shape_cast %43 : vector<16x128xf32> to vector<1x16x128xf32>
    tpu.vector_store %arg5[%44, %c0_28, %c0_29], %47 {strides = array<i32>} : memref<8x16x128xf32, #tpu.memory_space<vmem>>, vector<1x16x128xf32>,
    %c4_i32 = arith.constant 4 : i32
    %c0_30 = arith.constant 0 : index
    %c0_31 = arith.constant 0 : index
    %48 = vector.load %arg4[%c0_30, %c0_31] : memref<128x128xf32, #tpu.memory_space<vmem>>, vector<128x128xf32>
    %cst_32 = arith.constant dense<0.000000e+00> : vector<16x128xf32>
    %49 = tpu.matmul %43, %48, %cst_32 {dimension_numbers = #tpu.dot_dimension_numbers<[1], [0], [0], [1], [0, 0, 1, 1], [], []>} : vector<16x128xf32>, vector<128x128xf32>, vector<16x128xf32> -> vector<16x128xf32>
    %50 = arith.index_cast %c4_i32 : i32 to index
    %c0_33 = arith.constant 0 : index
    %c0_34 = arith.constant 0 : index
    %51 = vector.load %arg2[%50, %c0_33, %c0_34] : memref<8x16x128xf32, #tpu.memory_space<vmem>>, vector<1x16x128xf32>
    %52 = vector.shape_cast %51 : vector<1x16x128xf32> to vector<16x128xf32>
    %53 = arith.addf %52, %49 : vector<16x128xf32>
    %54 = math.tanh %53 : vector<16x128xf32>
    %55 = arith.index_cast %c4_i32 : i32 to index
    %c0_35 = arith.constant 0 : index
    %c0_36 = arith.constant 0 : index
    %56 = vector.load %arg5[%55, %c0_35, %c0_36] : memref<8x16x128xf32, #tpu.memory_space<vmem>>, vector<1x16x128xf32>
    %57 = vector.shape_cast %56 : vector<1x16x128xf32> to vector<16x128xf32>
    %58 = vector.shape_cast %54 : vector<16x128xf32> to vector<1x16x128xf32>
    tpu.vector_store %arg5[%55, %c0_35, %c0_36], %58 {strides = array<i32>} : memref<8x16x128xf32, #tpu.memory_space<vmem>>, vector<1x16x128xf32>,
    %c5_i32 = arith.constant 5 : i32
    %c0_37 = arith.constant 0 : index
    %c0_38 = arith.constant 0 : index
    %59 = vector.load %arg4[%c0_37, %c0_38] : memref<128x128xf32, #tpu.memory_space<vmem>>, vector<128x128xf32>
    %cst_39 = arith.constant dense<0.000000e+00> : vector<16x128xf32>
    %60 = tpu.matmul %54, %59, %cst_39 {dimension_numbers = #tpu.dot_dimension_numbers<[1], [0], [0], [1], [0, 0, 1, 1], [], []>} : vector<16x128xf32>, vector<128x128xf32>, vector<16x128xf32> -> vector<16x128xf32>
    %61 = arith.index_cast %c5_i32 : i32 to index
    %c0_40 = arith.constant 0 : index
    %c0_41 = arith.constant 0 : index
    %62 = vector.load %arg2[%61, %c0_40, %c0_41] : memref<8x16x128xf32, #tpu.memory_space<vmem>>, vector<1x16x128xf32>
    %63 = vector.shape_cast %62 : vector<1x16x128xf32> to vector<16x128xf32>
    %64 = arith.addf %63, %60 : vector<16x128xf32>
    %65 = math.tanh %64 : vector<16x128xf32>
    %66 = arith.index_cast %c5_i32 : i32 to index
    %c0_42 = arith.constant 0 : index
    %c0_43 = arith.constant 0 : index
    %67 = vector.load %arg5[%66, %c0_42, %c0_43] : memref<8x16x128xf32, #tpu.memory_space<vmem>>, vector<1x16x128xf32>
    %68 = vector.shape_cast %67 : vector<1x16x128xf32> to vector<16x128xf32>
    %69 = vector.shape_cast %65 : vector<16x128xf32> to vector<1x16x128xf32>
    tpu.vector_store %arg5[%66, %c0_42, %c0_43], %69 {strides = array<i32>} : memref<8x16x128xf32, #tpu.memory_space<vmem>>, vector<1x16x128xf32>,
    %c6_i32 = arith.constant 6 : i32
    %c0_44 = arith.constant 0 : index
    %c0_45 = arith.constant 0 : index
    %70 = vector.load %arg4[%c0_44, %c0_45] : memref<128x128xf32, #tpu.memory_space<vmem>>, vector<128x128xf32>
    %cst_46 = arith.constant dense<0.000000e+00> : vector<16x128xf32>
    %71 = tpu.matmul %65, %70, %cst_46 {dimension_numbers = #tpu.dot_dimension_numbers<[1], [0], [0], [1], [0, 0, 1, 1], [], []>} : vector<16x128xf32>, vector<128x128xf32>, vector<16x128xf32> -> vector<16x128xf32>
    %72 = arith.index_cast %c6_i32 : i32 to index
    %c0_47 = arith.constant 0 : index
    %c0_48 = arith.constant 0 : index
    %73 = vector.load %arg2[%72, %c0_47, %c0_48] : memref<8x16x128xf32, #tpu.memory_space<vmem>>, vector<1x16x128xf32>
    %74 = vector.shape_cast %73 : vector<1x16x128xf32> to vector<16x128xf32>
    %75 = arith.addf %74, %71 : vector<16x128xf32>
    %76 = math.tanh %75 : vector<16x128xf32>
    %77 = arith.index_cast %c6_i32 : i32 to index
    %c0_49 = arith.constant 0 : index
    %c0_50 = arith.constant 0 : index
    %78 = vector.load %arg5[%77, %c0_49, %c0_50] : memref<8x16x128xf32, #tpu.memory_space<vmem>>, vector<1x16x128xf32>
    %79 = vector.shape_cast %78 : vector<1x16x128xf32> to vector<16x128xf32>
    %80 = vector.shape_cast %76 : vector<16x128xf32> to vector<1x16x128xf32>
    tpu.vector_store %arg5[%77, %c0_49, %c0_50], %80 {strides = array<i32>} : memref<8x16x128xf32, #tpu.memory_space<vmem>>, vector<1x16x128xf32>,
    %c7_i32 = arith.constant 7 : i32
    %c0_51 = arith.constant 0 : index
    %c0_52 = arith.constant 0 : index
    %81 = vector.load %arg4[%c0_51, %c0_52] : memref<128x128xf32, #tpu.memory_space<vmem>>, vector<128x128xf32>
    %cst_53 = arith.constant dense<0.000000e+00> : vector<16x128xf32>
    %82 = tpu.matmul %76, %81, %cst_53 {dimension_numbers = #tpu.dot_dimension_numbers<[1], [0], [0], [1], [0, 0, 1, 1], [], []>} : vector<16x128xf32>, vector<128x128xf32>, vector<16x128xf32> -> vector<16x128xf32>
    %83 = arith.index_cast %c7_i32 : i32 to index
    %c0_54 = arith.constant 0 : index
    %c0_55 = arith.constant 0 : index
    %84 = vector.load %arg2[%83, %c0_54, %c0_55] : memref<8x16x128xf32, #tpu.memory_space<vmem>>, vector<1x16x128xf32>
    %85 = vector.shape_cast %84 : vector<1x16x128xf32> to vector<16x128xf32>
    %86 = arith.addf %85, %82 : vector<16x128xf32>
    %87 = math.tanh %86 : vector<16x128xf32>
    %88 = arith.index_cast %c7_i32 : i32 to index
    %c0_56 = arith.constant 0 : index
    %c0_57 = arith.constant 0 : index
    %89 = vector.load %arg5[%88, %c0_56, %c0_57] : memref<8x16x128xf32, #tpu.memory_space<vmem>>, vector<1x16x128xf32>
    %90 = vector.shape_cast %89 : vector<1x16x128xf32> to vector<16x128xf32>
    %91 = vector.shape_cast %87 : vector<16x128xf32> to vector<1x16x128xf32>
    tpu.vector_store %arg5[%88, %c0_56, %c0_57], %91 {strides = array<i32>} : memref<8x16x128xf32, #tpu.memory_space<vmem>>, vector<1x16x128xf32>,
    %c8_i32 = arith.constant 8 : i32
    %c0_58 = arith.constant 0 : index
    %c0_59 = arith.constant 0 : index
    %92 = vector.load %arg6[%c0_58, %c0_59] : memref<16x128xf32, #tpu.memory_space<vmem>>, vector<16x128xf32>
    tpu.vector_store %arg6[%c0_58, %c0_59], %87 {strides = array<i32>} : memref<16x128xf32, #tpu.memory_space<vmem>>, vector<16x128xf32>,
    return
  }
  func.func @transform_0(%arg0: i32, %arg1: i32) -> (i32, i32, i32) {
    %c0_i32 = arith.constant 0 : i32
    %c0_i32_0 = arith.constant 0 : i32
    return %arg1, %arg0, %c0_i32 : i32, i32, i32
  }
  func.func @transform_1(%arg0: i32, %arg1: i32) -> (i32, i32) {
    %c0_i32 = arith.constant 0 : i32
    %c0_i32_0 = arith.constant 0 : i32
    return %arg0, %c0_i32 : i32, i32
  }
  func.func @transform_2(%arg0: i32, %arg1: i32) -> (i32, i32) {
    %c0_i32 = arith.constant 0 : i32
    %c0_i32_0 = arith.constant 0 : i32
    %c0_i32_1 = arith.constant 0 : i32
    return %c0_i32, %c0_i32_0 : i32, i32
  }
  func.func @transform_3(%arg0: i32, %arg1: i32) -> (i32, i32, i32) {
    %c0_i32 = arith.constant 0 : i32
    %c0_i32_0 = arith.constant 0 : i32
    return %arg1, %arg0, %c0_i32 : i32, i32, i32
  }
}

</mosaic_0001>

<bundles_post_ra>
// kernel: decoder_forward.1
= control target key start
LH: loop header
LB: loop body
LE: loop exit
PB: predicated region body
PF: predicated region fallthrough
CT: control target
= control target key end

     0   :  { %s810_s2 = inlined_call_operand.vmem [shape: f32[128,128], index: 2, kind: input, shape index: {}]   ;;  %s811_s1 = inlined_call_operand.vmem [shape: f32[16,128], index: 1, kind: input, shape index: {}]   ;;  %s812_s0 = inlined_call_operand.vmem [shape: f32[8,16,128], index: 0, kind: input, shape index: {}]   ;;  %s813_s3 = inlined_call_operand.vmem [shape: f32[8,16,128], index: 3, kind: output, shape index: {}]  }
   0x1   :  { %v503_v0 = vld [vmem:[%s810_s2 + $0x78] sm:$0xff]  ;;  %v508_v1 = vld [vmem:[%s810_s2 + $0x70] sm:$0xff]  ;;  %v515_v2 = vld [vmem:[%s810_s2 + $0x68] sm:$0xff] }
   0x2   :  { %40 = vmatpush.msra.mxu0 %v503_v0  ;;  %87 = vmatpush.msra.mxu1 %v503_v0  ;;  %v524_v3 = vld [vmem:[%s810_s2 + $0x60] sm:$0xff]  ;;  %v533_v4 = vld [vmem:[%s810_s2 + $0x58] sm:$0xff]  ;;  %v542_v5 = vld [vmem:[%s810_s2 + $0x50] sm:$0xff] }
   0x3   :  { %136 = vmatpush.msra.mxu2 %v503_v0  ;;  %185 = vmatpush.msra.mxu3 %v503_v0  ;;  %v551_v6 = vld [vmem:[%s810_s2 + $0x48] sm:$0xff]  ;;  %v560_v7 = vld [vmem:[%s810_s2 + $0x40] sm:$0xff]  ;;  %v569_v8 = vld [vmem:[%s810_s2 + $0x38] sm:$0xff] }
   0x4   :  { %41 = vmatpush.msra.mxu0 %v508_v1  ;;  %88 = vmatpush.msra.mxu1 %v508_v1  ;;  %v578_v9 = vld [vmem:[%s810_s2 + $0x30] sm:$0xff]  ;;  %v587_v10 = vld [vmem:[%s810_s2 + $0x28] sm:$0xff]  ;;  %v596_v11 = vld [vmem:[%s810_s2 + $0x20] sm:$0xff] }
   0x5   :  { %137 = vmatpush.msra.mxu2 %v508_v1  ;;  %186 = vmatpush.msra.mxu3 %v508_v1  ;;  %v605_v12 = vld [vmem:[%s810_s2 + $0x18] sm:$0xff]  ;;  %v614_v13 = vld [vmem:[%s810_s2 + $0x10] sm:$0xff]  ;;  %v623_v14 = vld [vmem:[%s810_s2 + $0x8] sm:$0xff] }
   0x6   :  { %42 = vmatpush.msra.mxu0 %v515_v2  ;;  %89 = vmatpush.msra.mxu1 %v515_v2  ;;  %v632_v15 = vld [vmem:[%s810_s2] sm:$0xff]  ;;  %v19_v17 = vld [vmem:[%s811_s1 + $0x8] sm:$0xff]  ;;  %v420_v26 = vld [vmem:[%s812_s0 + $0x10] sm:$0xff] }
   0x7   :  { %138 = vmatpush.msra.mxu2 %v515_v2  ;;  %187 = vmatpush.msra.mxu3 %v515_v2  ;;  %v18_v16 = vld [vmem:[%s811_s1] sm:$0xff]  ;;  %v64_v21 = vld [vmem:[%s812_s0 + $0x8] sm:$0xff]  ;;  %v421_v29 = vld [vmem:[%s812_s0 + $0x18] sm:$0xff] }
   0x8   :  { %43 = vmatpush.msra.mxu0 %v524_v3  ;;  %90 = vmatpush.msra.mxu1 %v524_v3  ;;  %v63_v18 = vld [vmem:[%s812_s0] sm:$0xff]  ;;  %v425_v37 = vld [vmem:[%s812_s0 + $0x28] sm:$0xff]  ;;  %v428_v42 = vld [vmem:[%s812_s0 + $0x30] sm:$0xff] }
   0x9   :  { %139 = vmatpush.msra.mxu2 %v524_v3  ;;  %188 = vmatpush.msra.mxu3 %v524_v3  ;;  %v424_v34 = vld [vmem:[%s812_s0 + $0x20] sm:$0xff]  ;;  %v429_v45 = vld [vmem:[%s812_s0 + $0x38] sm:$0xff]  ;;  %v433_v53 = vld [vmem:[%s812_s0 + $0x48] sm:$0xff] }
   0xa   :  { %44 = vmatpush.msra.mxu0 %v533_v4  ;;  %91 = vmatpush.msra.mxu1 %v533_v4  ;;  %v432_v50 = vld [vmem:[%s812_s0 + $0x40] sm:$0xff]  ;;  %v436_v58 = vld [vmem:[%s812_s0 + $0x50] sm:$0xff]  ;;  %v437_v61 = vld [vmem:[%s812_s0 + $0x58] sm:$0xff] }
   0xb   :  { %140 = vmatpush.msra.mxu2 %v533_v4  ;;  %189 = vmatpush.msra.mxu3 %v533_v4 }
   0xc   :  { %45 = vmatpush.msra.mxu0 %v542_v5  ;;  %92 = vmatpush.msra.mxu1 %v542_v5 }
   0xd   :  { %141 = vmatpush.msra.mxu2 %v542_v5  ;;  %190 = vmatpush.msra.mxu3 %v542_v5 }
   0xe   :  { %46 = vmatpush.msra.mxu0 %v551_v6  ;;  %93 = vmatpush.msra.mxu1 %v551_v6 }
   0xf   :  { %142 = vmatpush.msra.mxu2 %v551_v6  ;;  %191 = vmatpush.msra.mxu3 %v551_v6 }
  0x10   :  { %47 = vmatpush.msra.mxu0 %v560_v7  ;;  %94 = vmatpush.msra.mxu1 %v560_v7 }
  0x11   :  { %143 = vmatpush.msra.mxu2 %v560_v7  ;;  %192 = vmatpush.msra.mxu3 %v560_v7 }
  0x12   :  { %48 = vmatpush.msra.mxu0 %v569_v8  ;;  %95 = vmatpush.msra.mxu1 %v569_v8 }
  0x13   :  { %144 = vmatpush.msra.mxu2 %v569_v8  ;;  %193 = vmatpush.msra.mxu3 %v569_v8 }
  0x14   :  { %49 = vmatpush.msra.mxu0 %v578_v9  ;;  %96 = vmatpush.msra.mxu1 %v578_v9 }
  0x15   :  { %145 = vmatpush.msra.mxu2 %v578_v9  ;;  %194 = vmatpush.msra.mxu3 %v578_v9 }
  0x16   :  { %50 = vmatpush.msra.mxu0 %v587_v10  ;;  %97 = vmatpush.msra.mxu1 %v587_v10 }
  0x17   :  { %146 = vmatpush.msra.mxu2 %v587_v10  ;;  %195 = vmatpush.msra.mxu3 %v587_v10 }
  0x18   :  { %51 = vmatpush.msra.mxu0 %v596_v11  ;;  %98 = vmatpush.msra.mxu1 %v596_v11 }
  0x19   :  { %147 = vmatpush.msra.mxu2 %v596_v11  ;;  %196 = vmatpush.msra.mxu3 %v596_v11 }
  0x1a   :  { %52 = vmatpush.msra.mxu0 %v605_v12  ;;  %99 = vmatpush.msra.mxu1 %v605_v12 }
  0x1b   :  { %148 = vmatpush.msra.mxu2 %v605_v12  ;;  %197 = vmatpush.msra.mxu3 %v605_v12 }
  0x1c   :  { %53 = vmatpush.msra.mxu0 %v614_v13  ;;  %100 = vmatpush.msra.mxu1 %v614_v13 }
  0x1d   :  { %149 = vmatpush.msra.mxu2 %v614_v13  ;;  %198 = vmatpush.msra.mxu3 %v614_v13 }
  0x1e   :  { %54 = vmatpush.msra.mxu0 %v623_v14  ;;  %101 = vmatpush.msra.mxu1 %v623_v14 }
  0x1f   :  { %150 = vmatpush.msra.mxu2 %v623_v14  ;;  %199 = vmatpush.msra.mxu3 %v623_v14 }
  0x20   :  { %55 = vmatpush.msra.mxu0 %v632_v15  ;;  %102 = vmatpush.msra.mxu1 %v632_v15 }
  0x21   :  { %56 = vmatmul.f32.vlgmr.msra.gmra.mxu0 %v18_v16  ;;  %151 = vmatpush.msra.mxu2 %v632_v15 }
  0x22   :  { %200 = vmatpush.msra.mxu3 %v632_v15  ;;  %234 = vmatpush.msrb.mxu0 %v503_v0 }
  0x23   :  { %283 = vmatpush.msrb.mxu1 %v503_v0  ;;  %332 = vmatpush.msrb.mxu2 %v503_v0 }
  0x24   :  { %235 = vmatpush.msrb.mxu0 %v508_v1  ;;  %381 = vmatpush.msrb.mxu3 %v503_v0 }
  0x25   :  { %284 = vmatpush.msrb.mxu1 %v508_v1  ;;  %333 = vmatpush.msrb.mxu2 %v508_v1 }
  0x26   :  { %236 = vmatpush.msrb.mxu0 %v515_v2  ;;  %382 = vmatpush.msrb.mxu3 %v508_v1 }
  0x27   :  { %285 = vmatpush.msrb.mxu1 %v515_v2  ;;  %334 = vmatpush.msrb.mxu2 %v515_v2 }
  0x28   :  { %237 = vmatpush.msrb.mxu0 %v524_v3  ;;  %383 = vmatpush.msrb.mxu3 %v515_v2  ;;  %v440_v2 = vld [vmem:[%s812_s0 + $0x60] sm:$0xff] }
  0x29   :  { %59 = vmatmul.f32.gmra.mxu0 %v19_v17  ;;  %286 = vmatpush.msrb.mxu1 %v524_v3 }
  0x2a   :  { %238 = vmatpush.msrb.mxu0 %v533_v4  ;;  %335 = vmatpush.msrb.mxu2 %v524_v3 }
  0x2b   :  { %287 = vmatpush.msrb.mxu1 %v533_v4  ;;  %384 = vmatpush.msrb.mxu3 %v524_v3 }
  0x2c   :  { %239 = vmatpush.msrb.mxu0 %v542_v5  ;;  %336 = vmatpush.msrb.mxu2 %v533_v4 }
  0x2d   :  { %288 = vmatpush.msrb.mxu1 %v542_v5  ;;  %385 = vmatpush.msrb.mxu3 %v533_v4 }
  0x2e   :  { %240 = vmatpush.msrb.mxu0 %v551_v6  ;;  %337 = vmatpush.msrb.mxu2 %v542_v5 }
  0x2f   :  { %289 = vmatpush.msrb.mxu1 %v551_v6  ;;  %386 = vmatpush.msrb.mxu3 %v542_v5  ;;  %v441_v5 = vld [vmem:[%s812_s0 + $0x68] sm:$0xff] }
  0x30   :  { %241 = vmatpush.msrb.mxu0 %v560_v7  ;;  %338 = vmatpush.msrb.mxu2 %v551_v6 }
  0x31   :  { %290 = vmatpush.msrb.mxu1 %v560_v7  ;;  %387 = vmatpush.msrb.mxu3 %v551_v6 }
  0x32   :  { %242 = vmatpush.msrb.mxu0 %v569_v8  ;;  %339 = vmatpush.msrb.mxu2 %v560_v7 }
  0x33   :  { %291 = vmatpush.msrb.mxu1 %v569_v8  ;;  %388 = vmatpush.msrb.mxu3 %v560_v7 }
  0x34   :  { %243 = vmatpush.msrb.mxu0 %v578_v9  ;;  %340 = vmatpush.msrb.mxu2 %v569_v8 }
  0x35   :  { %292 = vmatpush.msrb.mxu1 %v578_v9  ;;  %389 = vmatpush.msrb.mxu3 %v569_v8 }
  0x36   :  { %244 = vmatpush.msrb.mxu0 %v587_v10  ;;  %341 = vmatpush.msrb.mxu2 %v578_v9 }
  0x37   :  { %293 = vmatpush.msrb.mxu1 %v587_v10  ;;  %390 = vmatpush.msrb.mxu3 %v578_v9 }
  0x38   :  { %245 = vmatpush.msrb.mxu0 %v596_v11  ;;  %342 = vmatpush.msrb.mxu2 %v587_v10 }
  0x39   :  { %294 = vmatpush.msrb.mxu1 %v596_v11  ;;  %391 = vmatpush.msrb.mxu3 %v587_v10  ;;  %v444_v10 = vld [vmem:[%s812_s0 + $0x70] sm:$0xff] }
  0x3a   :  { %246 = vmatpush.msrb.mxu0 %v605_v12  ;;  %343 = vmatpush.msrb.mxu2 %v596_v11 }
  0x3b   :  { %295 = vmatpush.msrb.mxu1 %v605_v12  ;;  %392 = vmatpush.msrb.mxu3 %v596_v11 }
  0x3c   :  { %247 = vmatpush.msrb.mxu0 %v614_v13  ;;  %344 = vmatpush.msrb.mxu2 %v605_v12 }
  0x3d   :  { %296 = vmatpush.msrb.mxu1 %v614_v13  ;;  %393 = vmatpush.msrb.mxu3 %v605_v12 }
  0x3e   :  { %248 = vmatpush.msrb.mxu0 %v623_v14  ;;  %345 = vmatpush.msrb.mxu2 %v614_v13 }
  0x3f   :  { %297 = vmatpush.msrb.mxu1 %v623_v14  ;;  %394 = vmatpush.msrb.mxu3 %v614_v13  ;;  %v445_v13 = vld [vmem:[%s812_s0 + $0x78] sm:$0xff] }
  0x40   :  { %249 = vmatpush.msrb.mxu0 %v632_v15  ;;  %346 = vmatpush.msrb.mxu2 %v623_v14 }
  0x41   :  { %298 = vmatpush.msrb.mxu1 %v632_v15  ;;  %395 = vmatpush.msrb.mxu3 %v623_v14 }
  0x42   :  { %347 = vmatpush.msrb.mxu2 %v632_v15 }
  0x43   :  { %396 = vmatpush.msrb.mxu3 %v632_v15 }
  0x9e   :  { %v57_v19 = vpop.f32.mrf.mxu0 }
  0x9f   :  { %v65_v20 = vadd.f32 %v63_v18, %v57_v19 }
  0xa1   :  { %448 = vtanh.f32 %v65_v20 }
  0xa6   :  { %v60_v22 = vpop.f32.mrf.mxu0 }
  0xa7   :  { %v449_v23 = vpop.eup %448  ;;  %v66_v24 = vadd.f32 %v64_v21, %v60_v22 }
  0xa8   :  { %69 = vst [vmem:[%s813_s3] sm:$0xff] %v449_v23  ;;  %103 = vmatmul.f32.vlgmr.msra.gmra.mxu1 %v449_v23 }
  0xa9   :  { %450 = vtanh.f32 %v66_v24 }
  0xaf   :  { %v451_v25 = vpop.eup %450 }
  0xb0   :  { %70 = vst [vmem:[%s813_s3 + $0x8] sm:$0xff] %v451_v25  ;;  %106 = vmatmul.f32.gmra.mxu1 %v451_v25 }
 0x125   :  { %v104_v27 = vpop.f32.mrf.mxu1 }
 0x126   :  { %v113_v28 = vadd.f32 %v420_v26, %v104_v27 }
 0x128   :  { %452 = vtanh.f32 %v113_v28 }
 0x12d   :  { %v107_v30 = vpop.f32.mrf.mxu1 }
 0x12e   :  { %v453_v31 = vpop.eup %452  ;;  %v114_v32 = vadd.f32 %v421_v29, %v107_v30 }
 0x12f   :  { %422 = vst [vmem:[%s813_s3 + $0x10] sm:$0xff] %v453_v31  ;;  %152 = vmatmul.f32.vlgmr.msra.gmra.mxu2 %v453_v31 }
 0x130   :  { %454 = vtanh.f32 %v114_v32 }
 0x136   :  { %v455_v33 = vpop.eup %454 }
 0x137   :  { %423 = vst [vmem:[%s813_s3 + $0x18] sm:$0xff] %v455_v33  ;;  %155 = vmatmul.f32.gmra.mxu2 %v455_v33 }
 0x1b2   :  { %v153_v35 = vpop.f32.mrf.mxu2 }
 0x1b3   :  { %v162_v36 = vadd.f32 %v424_v34, %v153_v35 }
 0x1b5   :  { %456 = vtanh.f32 %v162_v36 }
 0x1ba   :  { %v156_v38 = vpop.f32.mrf.mxu2 }
 0x1bb   :  { %v457_v39 = vpop.eup %456  ;;  %v163_v40 = vadd.f32 %v425_v37, %v156_v38 }
 0x1bc   :  { %426 = vst [vmem:[%s813_s3 + $0x20] sm:$0xff] %v457_v39  ;;  %201 = vmatmul.f32.vlgmr.msra.gmra.mxu3 %v457_v39 }
 0x1bd   :  { %458 = vtanh.f32 %v163_v40 }
 0x1c3   :  { %v459_v41 = vpop.eup %458 }
 0x1c4   :  { %427 = vst [vmem:[%s813_s3 + $0x28] sm:$0xff] %v459_v41  ;;  %204 = vmatmul.f32.gmra.mxu3 %v459_v41 }
 0x23f   :  { %v202_v43 = vpop.f32.mrf.mxu3 }
 0x240   :  { %v211_v44 = vadd.f32 %v428_v42, %v202_v43 }
 0x242   :  { %460 = vtanh.f32 %v211_v44 }
 0x247   :  { %v205_v46 = vpop.f32.mrf.mxu3 }
 0x248   :  { %v461_v47 = vpop.eup %460  ;;  %v212_v48 = vadd.f32 %v429_v45, %v205_v46 }
 0x249   :  { %430 = vst [vmem:[%s813_s3 + $0x30] sm:$0xff] %v461_v47  ;;  %250 = vmatmul.f32.vlgmr.msrb.gmra.mxu0 %v461_v47 }
 0x24a   :  { %462 = vtanh.f32 %v212_v48 }
 0x250   :  { %v463_v49 = vpop.eup %462 }
 0x251   :  { %431 = vst [vmem:[%s813_s3 + $0x38] sm:$0xff] %v463_v49  ;;  %253 = vmatmul.f32.gmra.mxu0 %v463_v49 }
 0x2c6   :  { %v251_v51 = vpop.f32.mrf.mxu0 }
 0x2c7   :  { %v260_v52 = vadd.f32 %v432_v50, %v251_v51 }
 0x2c9   :  { %464 = vtanh.f32 %v260_v52 }
 0x2ce   :  { %v254_v54 = vpop.f32.mrf.mxu0 }
 0x2cf   :  { %v465_v55 = vpop.eup %464  ;;  %v261_v56 = vadd.f32 %v433_v53, %v254_v54 }
 0x2d0   :  { %434 = vst [vmem:[%s813_s3 + $0x40] sm:$0xff] %v465_v55  ;;  %299 = vmatmul.f32.vlgmr.msrb.gmra.mxu1 %v465_v55 }
 0x2d1   :  { %466 = vtanh.f32 %v261_v56 }
 0x2d7   :  { %v467_v57 = vpop.eup %466 }
 0x2d8   :  { %435 = vst [vmem:[%s813_s3 + $0x48] sm:$0xff] %v467_v57  ;;  %302 = vmatmul.f32.gmra.mxu1 %v467_v57 }
 0x34d   :  { %v300_v59 = vpop.f32.mrf.mxu1 }
 0x34e   :  { %v309_v60 = vadd.f32 %v436_v58, %v300_v59 }
 0x350   :  { %468 = vtanh.f32 %v309_v60 }
 0x355   :  { %v303_v62 = vpop.f32.mrf.mxu1 }
 0x356   :  { %v469_v63 = vpop.eup %468  ;;  %v310_v0 = vadd.f32 %v437_v61, %v303_v62 }
 0x357   :  { %438 = vst [vmem:[%s813_s3 + $0x50] sm:$0xff] %v469_v63  ;;  %348 = vmatmul.f32.vlgmr.msrb.gmra.mxu2 %v469_v63 }
 0x358   :  { %470 = vtanh.f32 %v310_v0 }
 0x35e   :  { %v471_v1 = vpop.eup %470 }
 0x35f   :  { %439 = vst [vmem:[%s813_s3 + $0x58] sm:$0xff] %v471_v1  ;;  %351 = vmatmul.f32.gmra.mxu2 %v471_v1 }
 0x3da   :  { %v349_v3 = vpop.f32.mrf.mxu2 }
 0x3db   :  { %v358_v4 = vadd.f32 %v440_v2, %v349_v3 }
 0x3dd   :  { %472 = vtanh.f32 %v358_v4 }
 0x3e2   :  { %v352_v6 = vpop.f32.mrf.mxu2 }
 0x3e3   :  { %v473_v7 = vpop.eup %472  ;;  %v359_v8 = vadd.f32 %v441_v5, %v352_v6 }
 0x3e4   :  { %442 = vst [vmem:[%s813_s3 + $0x60] sm:$0xff] %v473_v7  ;;  %397 = vmatmul.f32.vlgmr.msrb.gmra.mxu3 %v473_v7 }
 0x3e5   :  { %474 = vtanh.f32 %v359_v8 }
 0x3eb   :  { %v475_v9 = vpop.eup %474 }
 0x3ec   :  { %443 = vst [vmem:[%s813_s3 + $0x68] sm:$0xff] %v475_v9  ;;  %400 = vmatmul.f32.gmra.mxu3 %v475_v9 }
 0x467   :  { %v398_v11 = vpop.f32.mrf.mxu3 }
 0x468   :  { %v407_v12 = vadd.f32 %v444_v10, %v398_v11 }
 0x46a   :  { %476 = vtanh.f32 %v407_v12 }
 0x46f   :  { %v401_v14 = vpop.f32.mrf.mxu3 }
 0x470   :  { %v477_v15 = vpop.eup %476  ;;  %v408_v16 = vadd.f32 %v445_v13, %v401_v14 }
 0x471   :  { %446 = vst [vmem:[%s813_s3 + $0x70] sm:$0xff] %v477_v15 }
 0x472   :  { %478 = vtanh.f32 %v408_v16 }
 0x478   :  { %v479_v17 = vpop.eup %478 }
 0x479   :  { %447 = vst [vmem:[%s813_s3 + $0x78] sm:$0xff] %v479_v17 }

</bundles_post_ra>
